<compile_context>
chip_gen: v7x
topology: tpu7x:2x2x1
jax: 0.10.0
libtpu: 0.0.40
codegen_flags: <defaults>
</compile_context>

<pallas_src>
import functools

import jax
import jax.numpy as jnp
from jax.experimental import pallas as pl
from jax.experimental.pallas import tpu as pltpu

LOG_SIG_MAX = 2.0
LOG_SIG_MIN = -20.0


def _round_up(x, m):
    return ((x + m - 1) // m) * m


# ------------------------------ kernel -------------------------------------

def _policy_kernel(x_ref, w1_ref, b1_ref, w2_ref, b2_ref, wh_ref, bh_ref,
                   out_ref, *, num_actions):
    # state tile arrives as f32; cast to bf16 in an idle VPU slot (halves the
    # MXU operand width, f32 accumulation via preferred_element_type).
    x = x_ref[...].astype(jnp.bfloat16)

    # hidden layer 1 + ReLU (bias/ReLU in f32)
    h1 = jnp.dot(x, w1_ref[...], preferred_element_type=jnp.float32) + b1_ref[...]
    h1 = jnp.maximum(h1, 0.0)

    # hidden layer 2 + ReLU
    h2 = jnp.dot(h1.astype(jnp.bfloat16), w2_ref[...],
                 preferred_element_type=jnp.float32) + b2_ref[...]
    h2 = jnp.maximum(h2, 0.0)

    # fused output heads: columns [0, A) = mean, [A, 2A) = log_std
    heads = jnp.dot(h2.astype(jnp.bfloat16), wh_ref[...],
                    preferred_element_type=jnp.float32) + bh_ref[...]

    # clamp only the log_std half
    col = jax.lax.broadcasted_iota(jnp.int32, heads.shape, 1)
    clipped = jnp.clip(heads, LOG_SIG_MIN, LOG_SIG_MAX)
    sel = jnp.where(col >= num_actions, clipped, heads)

    # write transposed [2A, tile_b]: batch on the lane axis -> lane-dense
    # stores, ~8x fewer output HBM bytes than a [tile_b, 128] slab.
    out_ref[...] = sel.T


# --------------------------- param packing ---------------------------------

def pack_params(params):
    """Fuse the two heads, zero-pad the hidden dim to a multiple of 128 and
    pre-cast weights to bf16 (done once, outside the hot path).
    The state-feature dim and the [2A] head dim are kept at natural size."""
    w1, b1, w2, b2, wm, bm, ws, bs = params
    din, h = w1.shape
    h_p = _round_up(h, 128)

    w1p = jnp.zeros((din, h_p), jnp.bfloat16).at[:, :h].set(w1.astype(jnp.bfloat16))
    b1p = jnp.zeros((1, h_p), jnp.float32).at[:, :h].set(b1)
    w2p = jnp.zeros((h_p, h_p), jnp.bfloat16).at[:h, :h].set(w2.astype(jnp.bfloat16))
    b2p = jnp.zeros((1, h_p), jnp.float32).at[:, :h].set(b2)

    wh = jnp.concatenate([wm, ws], axis=1)           # [H, 2A]
    bh = jnp.concatenate([bm, bs], axis=1)           # [1, 2A]
    whp = jnp.zeros((h_p, wh.shape[1]), jnp.bfloat16).at[:h, :].set(
        wh.astype(jnp.bfloat16))
    bhp = bh.astype(jnp.float32)
    return (w1p, b1p, w2p, b2p, whp, bhp)


# ----------------------------- tiling --------------------------------------

def _choose_tile_b(B, h_p):
    if B <= 512:
        # single grid step; block == full batch extent (legal even if B%8!=0).
        # At this scale the kernel is fixed-overhead bound; the real fix is
        # batching more rows per call, not tile tweaks.
        return B
    # multi-step: tile must be a multiple of 128 so the transposed output's
    # lane (batch) dim stays unmasked.  Target >= 8 grid steps (pipelining +
    # both v7x TensorCores), 512-2048 rows/step to amortize ~0.35us/step.
    tile = max(512, _round_up(B // 8, 512))
    tile = min(tile, 2048)
    # keep the two f32 [tile, h_p] intermediates within ~24 MiB of VMEM
    while tile > 512 and 2 * tile * h_p * 4 > 24 * 1024 * 1024:
        tile //= 2
    return tile


# ------------------------------ wrapper ------------------------------------

@functools.partial(jax.jit, static_argnames=("num_actions",))
def gaussian_policy_forward(state, packed_params, num_actions):
    """state: [B, dim_state_with_fake] float32. Returns (mean, log_std)."""
    w1, b1, w2, b2, wh, bh = packed_params
    state = state.astype(jnp.float32)
    B, din = state.shape
    h_p = w1.shape[1]
    a2 = wh.shape[1]                                  # 2 * num_actions

    tile_b = _choose_tile_b(B, h_p)
    grid = (pl.cdiv(B, tile_b),)

    flops = 2 * B * (din * h_p + h_p * h_p + h_p * a2)
    bytes_accessed = (B * din * 4
                      + (w1.size + w2.size + wh.size) * 2
                      + (b1.size + b2.size + bh.size) * 4
                      + a2 * B * 4)

    # per-step VMEM estimate: double-buffered state/out tiles, (double-
    # buffered) resident weights, f32 h1/h2 temps + bf16 casts.
    vmem_est = (2 * tile_b * din * 4
                + 2 * a2 * tile_b * 4
                + 2 * (w1.size + w2.size + wh.size) * 2
                + 2 * (b1.size + b2.size + bh.size) * 4
                + 2 * tile_b * h_p * 4
                + 2 * tile_b * h_p * 2)
    vmem_limit = None
    if vmem_est > 12 * 1024 * 1024:                   # only override when needed
        vmem_limit = int(min(64 * 1024 * 1024, (vmem_est * 3) // 2))

    out = pl.pallas_call(
        functools.partial(_policy_kernel, num_actions=num_actions),
        out_shape=jax.ShapeDtypeStruct((a2, B), jnp.float32),
        grid=grid,
        in_specs=[
            pl.BlockSpec((tile_b, din), lambda i: (i, 0)),   # state tile (f32)
            pl.BlockSpec((din, h_p), lambda i: (0, 0)),      # W1 (resident)
            pl.BlockSpec((1, h_p), lambda i: (0, 0)),        # b1
            pl.BlockSpec((h_p, h_p), lambda i: (0, 0)),      # W2
            pl.BlockSpec((1, h_p), lambda i: (0, 0)),        # b2
            pl.BlockSpec((h_p, a2), lambda i: (0, 0)),       # W_head (fused)
            pl.BlockSpec((1, a2), lambda i: (0, 0)),         # b_head
        ],
        out_specs=pl.BlockSpec((a2, tile_b), lambda i: (0, i)),
        compiler_params=pltpu.CompilerParams(
            dimension_semantics=("parallel",),
            vmem_limit_bytes=vmem_limit),
        cost_estimate=pl.CostEstimate(
            flops=flops, transcendentals=0, bytes_accessed=bytes_accessed),
    )(state, w1, b1, w2, b2, wh, bh)

    mean = out[:num_actions, :].T                     # [B, A]
    log_std = out[num_actions:, :].T                  # [B, A]
    return mean, log_std


# ----------------------- init + glue (plain JAX) ---------------------------

def xavier_uniform(key, fan_in, fan_out, gain=1.0):
    # matches torch.nn.init.xavier_uniform_ (gain=1); stored as [in, out]
    bound = gain * jnp.sqrt(6.0 / (fan_in + fan_out))
    return jax.random.uniform(key, (fan_in, fan_out), jnp.float32, -bound, bound)


def init_params(key, dim_state_with_fake, hidden_dim, num_actions):
    k1, k2, k3, k4 = jax.random.split(key, 4)
    w1 = xavier_uniform(k1, dim_state_with_fake, hidden_dim)
    b1 = jnp.zeros((1, hidden_dim), jnp.float32)
    w2 = xavier_uniform(k2, hidden_dim, hidden_dim)
    b2 = jnp.zeros((1, hidden_dim), jnp.float32)
    wm = xavier_uniform(k3, hidden_dim, num_actions)
    bm = jnp.zeros((1, num_actions), jnp.float32)
    ws = xavier_uniform(k4, hidden_dim, num_actions)
    bs = jnp.zeros((1, num_actions), jnp.float32)
    return (w1, b1, w2, b2, wm, bm, ws, bs)


def add_fake_features(state, num_fake_features, fake_noise_std, key):
    # utils.add_fake_features: append gaussian-noise fake features
    if num_fake_features == 0:
        return state
    noise = fake_noise_std * jax.random.normal(
        key, (state.shape[0], num_fake_features), state.dtype)
    return jnp.concatenate([state, noise], axis=1)


def permute_features(state, permutation):
    # utils.permute_features: permutation is None -> identity
    if permutation is None:
        return state
    return state[:, permutation]


def _reference_forward(state, params):
    w1, b1, w2, b2, wm, bm, ws, bs = params
    h1 = jnp.maximum(state @ w1 + b1, 0.0)
    h2 = jnp.maximum(h1 @ w2 + b2, 0.0)
    mean = h2 @ wm + bm
    log_std = jnp.clip(h2 @ ws + bs, LOG_SIG_MIN, LOG_SIG_MAX)
    return mean, log_std


if __name__ == "__main__":
    key = jax.random.PRNGKey(0)
    k_state, k_noise, k_params = jax.random.split(key, 3)

    # small shapes consistent with the module's __init__
    batch = 8
    state_dim = 28
    num_fake_features = 4
    dim_state_with_fake = state_dim + num_fake_features
    hidden_dim = 32            # args.num_hid_neurons
    num_actions = 8
    fake_noise_std = 0.1       # args.fake_noise_std

    # TODO(synk): exact fake_noise_generator / activation choice come from
    # external utils/args; gaussian noise + ReLU used as the standard defaults.

    state = jax.random.normal(k_state, (batch, state_dim), jnp.float32)
    state = add_fake_features(state, num_fake_features, fake_noise_std, k_noise)
    state = permute_features(state, None)

    params = init_params(k_params, dim_state_with_fake, hidden_dim, num_actions)
    packed = pack_params(params)

    mean, log_std = gaussian_policy_forward(state, packed, num_actions)
    jax.block_until_ready((mean, log_std))

    # sanity: shapes, clamp range, and agreement with a pure-JAX f32 reference
    # (loose tolerance because matmul operands are bf16 in the kernel).
    assert mean.shape == (batch, num_actions)
    assert log_std.shape == (batch, num_actions)
    assert bool(jnp.all(log_std >= LOG_SIG_MIN)) and bool(jnp.all(log_std <= LOG_SIG_MAX))
    mean_ref, log_std_ref = _reference_forward(state, params)
    assert float(jnp.max(jnp.abs(mean - mean_ref))) < 0.1
    assert float(jnp.max(jnp.abs(log_std - log_std_ref))) < 0.1

    print("KERNEL_OK")
</pallas_src>

<mosaic_0001>
module attributes {stable_mosaic.version = 11 : i64} {
  func.func @_policy_kernel(%arg0: i32, %arg1: memref<8x32xf32, #tpu.memory_space<vmem>>, %arg2: memref<32x128xbf16, #tpu.memory_space<vmem>>, %arg3: memref<1x128xf32, #tpu.memory_space<vmem>>, %arg4: memref<128x128xbf16, #tpu.memory_space<vmem>>, %arg5: memref<1x128xf32, #tpu.memory_space<vmem>>, %arg6: memref<128x16xbf16, #tpu.memory_space<vmem>>, %arg7: memref<1x16xf32, #tpu.memory_space<vmem>>, %arg8: memref<16x8xf32, #tpu.memory_space<vmem>>) attributes {dimension_semantics = [#tpu.dimension_semantics<parallel>], iteration_bounds = array<i64: 1>, scalar_prefetch = 0 : i64, scratch_operands = 0 : i64, tpu.core_type = #tpu.core_type<tc>, window_params = [{transform_indices = @transform_0, window_bounds = array<i64: 8, 32>}, {pipeline_mode = #tpu.pipeline_mode<synchronous>, transform_indices = @transform_1, window_bounds = array<i64: 32, 128>}, {pipeline_mode = #tpu.pipeline_mode<synchronous>, transform_indices = @transform_2, window_bounds = array<i64: 1, 128>}, {pipeline_mode = #tpu.pipeline_mode<synchronous>, transform_indices = @transform_3, window_bounds = array<i64: 128, 128>}, {pipeline_mode = #tpu.pipeline_mode<synchronous>, transform_indices = @transform_4, window_bounds = array<i64: 1, 128>}, {pipeline_mode = #tpu.pipeline_mode<synchronous>, transform_indices = @transform_5, window_bounds = array<i64: 128, 16>}, {pipeline_mode = #tpu.pipeline_mode<synchronous>, transform_indices = @transform_6, window_bounds = array<i64: 1, 16>}, {transform_indices = @transform_7, window_bounds = array<i64: 16, 8>}]} {
    %c0 = arith.constant 0 : index
    %c0_0 = arith.constant 0 : index
    %0 = vector.load %arg1[%c0, %c0_0] : memref<8x32xf32, #tpu.memory_space<vmem>>, vector<8x32xf32>
    %1 = arith.truncf %0 : vector<8x32xf32> to vector<8x32xbf16>
    %c0_1 = arith.constant 0 : index
    %c0_2 = arith.constant 0 : index
    %2 = vector.load %arg2[%c0_1, %c0_2] : memref<32x128xbf16, #tpu.memory_space<vmem>>, vector<32x128xbf16>
    %cst = arith.constant dense<0.000000e+00> : vector<8x128xf32>
    %3 = tpu.matmul %1, %2, %cst {dimension_numbers = #tpu.dot_dimension_numbers<[1], [0], [0], [1], [0, 0, 1, 1], [], []>} : vector<8x32xbf16>, vector<32x128xbf16>, vector<8x128xf32> -> vector<8x128xf32>
    %c0_3 = arith.constant 0 : index
    %c0_4 = arith.constant 0 : index
    %4 = vector.load %arg3[%c0_3, %c0_4] : memref<1x128xf32, #tpu.memory_space<vmem>>, vector<1x128xf32>
    %5 = vector.broadcast %4 : vector<1x128xf32> to vector<8x128xf32>
    %6 = arith.addf %3, %5 : vector<8x128xf32>
    %cst_5 = arith.constant 0.000000e+00 : f32
    %7 = vector.broadcast %cst_5 : f32 to vector<8x128xf32>
    %8 = arith.maximumf %6, %7 : vector<8x128xf32>
    %9 = arith.truncf %8 : vector<8x128xf32> to vector<8x128xbf16>
    %c0_6 = arith.constant 0 : index
    %c0_7 = arith.constant 0 : index
    %10 = vector.load %arg4[%c0_6, %c0_7] : memref<128x128xbf16, #tpu.memory_space<vmem>>, vector<128x128xbf16>
    %cst_8 = arith.constant dense<0.000000e+00> : vector<8x128xf32>
    %11 = tpu.matmul %9, %10, %cst_8 {dimension_numbers = #tpu.dot_dimension_numbers<[1], [0], [0], [1], [0, 0, 1, 1], [], []>} : vector<8x128xbf16>, vector<128x128xbf16>, vector<8x128xf32> -> vector<8x128xf32>
    %c0_9 = arith.constant 0 : index
    %c0_10 = arith.constant 0 : index
    %12 = vector.load %arg5[%c0_9, %c0_10] : memref<1x128xf32, #tpu.memory_space<vmem>>, vector<1x128xf32>
    %13 = vector.broadcast %12 : vector<1x128xf32> to vector<8x128xf32>
    %14 = arith.addf %11, %13 : vector<8x128xf32>
    %cst_11 = arith.constant 0.000000e+00 : f32
    %15 = vector.broadcast %cst_11 : f32 to vector<8x128xf32>
    %16 = arith.maximumf %14, %15 : vector<8x128xf32>
    %17 = arith.truncf %16 : vector<8x128xf32> to vector<8x128xbf16>
    %c0_12 = arith.constant 0 : index
    %c0_13 = arith.constant 0 : index
    %18 = vector.load %arg6[%c0_12, %c0_13] : memref<128x16xbf16, #tpu.memory_space<vmem>>, vector<128x16xbf16>
    %cst_14 = arith.constant dense<0.000000e+00> : vector<8x16xf32>
    %19 = tpu.matmul %17, %18, %cst_14 {dimension_numbers = #tpu.dot_dimension_numbers<[1], [0], [0], [1], [0, 0, 1, 1], [], []>} : vector<8x128xbf16>, vector<128x16xbf16>, vector<8x16xf32> -> vector<8x16xf32>
    %c0_15 = arith.constant 0 : index
    %c0_16 = arith.constant 0 : index
    %20 = vector.load %arg7[%c0_15, %c0_16] : memref<1x16xf32, #tpu.memory_space<vmem>>, vector<1x16xf32>
    %21 = vector.broadcast %20 : vector<1x16xf32> to vector<8x16xf32>
    %22 = arith.addf %19, %21 : vector<8x16xf32>
    %23 = tpu.iota {dimensions = array<i32: 1>} : vector<8x16xi32>
    %cst_17 = arith.constant -2.000000e+01 : f32
    %cst_18 = arith.constant 2.000000e+00 : f32
    %24 = vector.broadcast %cst_17 : f32 to vector<8x16xf32>
    %25 = arith.maximumf %24, %22 : vector<8x16xf32>
    %26 = vector.broadcast %cst_18 : f32 to vector<8x16xf32>
    %27 = arith.minimumf %26, %25 : vector<8x16xf32>
    %c8_i32 = arith.constant 8 : i32
    %28 = vector.broadcast %c8_i32 : i32 to vector<8x16xi32>
    %29 = arith.cmpi sge, %23, %28 : vector<8x16xi32>
    %30 = arith.select %29, %27, %22 : vector<8x16xi1>, vector<8x16xf32>
    %31 = tpu.transpose %30, [1, 0] : vector<8x16xf32> -> vector<16x8xf32>
    %c0_19 = arith.constant 0 : index
    %c0_20 = arith.constant 0 : index
    %32 = vector.load %arg8[%c0_19, %c0_20] : memref<16x8xf32, #tpu.memory_space<vmem>>, vector<16x8xf32>
    tpu.vector_store %arg8[%c0_19, %c0_20], %31 {strides = array<i32>} : memref<16x8xf32, #tpu.memory_space<vmem>>, vector<16x8xf32>,
    return
  }
  func.func @transform_0(%arg0: i32) -> (i32, i32) {
    %c0_i32 = arith.constant 0 : i32
    %c0_i32_0 = arith.constant 0 : i32
    return %arg0, %c0_i32 : i32, i32
  }
  func.func @transform_1(%arg0: i32) -> (i32, i32) {
    %c0_i32 = arith.constant 0 : i32
    %c0_i32_0 = arith.constant 0 : i32
    %c0_i32_1 = arith.constant 0 : i32
    return %c0_i32, %c0_i32_0 : i32, i32
  }
  func.func @transform_2(%arg0: i32) -> (i32, i32) {
    %c0_i32 = arith.constant 0 : i32
    %c0_i32_0 = arith.constant 0 : i32
    %c0_i32_1 = arith.constant 0 : i32
    return %c0_i32, %c0_i32_0 : i32, i32
  }
  func.func @transform_3(%arg0: i32) -> (i32, i32) {
    %c0_i32 = arith.constant 0 : i32
    %c0_i32_0 = arith.constant 0 : i32
    %c0_i32_1 = arith.constant 0 : i32
    return %c0_i32, %c0_i32_0 : i32, i32
  }
  func.func @transform_4(%arg0: i32) -> (i32, i32) {
    %c0_i32 = arith.constant 0 : i32
    %c0_i32_0 = arith.constant 0 : i32
    %c0_i32_1 = arith.constant 0 : i32
    return %c0_i32, %c0_i32_0 : i32, i32
  }
  func.func @transform_5(%arg0: i32) -> (i32, i32) {
    %c0_i32 = arith.constant 0 : i32
    %c0_i32_0 = arith.constant 0 : i32
    %c0_i32_1 = arith.constant 0 : i32
    return %c0_i32, %c0_i32_0 : i32, i32
  }
  func.func @transform_6(%arg0: i32) -> (i32, i32) {
    %c0_i32 = arith.constant 0 : i32
    %c0_i32_0 = arith.constant 0 : i32
    %c0_i32_1 = arith.constant 0 : i32
    return %c0_i32, %c0_i32_0 : i32, i32
  }
  func.func @transform_7(%arg0: i32) -> (i32, i32) {
    %c0_i32 = arith.constant 0 : i32
    %c0_i32_0 = arith.constant 0 : i32
    return %c0_i32, %arg0 : i32, i32
  }
}

</mosaic_0001>

<bundles_post_ra>
// kernel: gaussian_policy_forward.1
= control target key start
LH: loop header
LB: loop body
LE: loop exit
PB: predicated region body
PF: predicated region fallthrough
CT: control target
= control target key end

     0   :  { %12 = vsyncpa [#allocation3], 0  ;;  %s516_s24 = smov [#allocation2]   ;;  %s664_s0 = inlined_call_operand.hbm [shape: f32[8,32], index: 0, kind: input, shape index: {}]   ;;  %s665_s1 = inlined_call_operand.vmem [shape: bf16[32,128], index: 1, kind: input, shape index: {}]   ;;  %s666_s2 = inlined_call_operand.vmem [shape: f32[1,128], index: 2, kind: input, shape index: {}]   ;;  %s667_s3 = inlined_call_operand.vmem [shape: bf16[128,128], index: 3, kind: input, shape index: {}]   ;;  %s668_s4 = inlined_call_operand.vmem [shape: f32[1,128], index: 4, kind: input, shape index: {}]   ;;  %s669_s5 = inlined_call_operand.vmem [shape: bf16[128,16], index: 5, kind: input, shape index: {}]   ;;  %s670_s6 = inlined_call_operand.vmem [shape: f32[1,16], index: 6, kind: input, shape index: {}]   ;;  %s671_s7 = inlined_call_operand.vmem [shape: f32[16,8], index: 7, kind: output, shape index: {}]  }
   0x1   :  { %s19_s25 = sshll.u32 %s516_s24, 4  ;;  %s492_s28 = scalar_lea.hbm %s664_s0, 128  ;;  %s20_s25 = int_to_ptr.vmem [resolvable:$true] %s19_s25 }
   0x2   :  { %p493_p0 = scmp.ne.s32.totalorder %s664_s0, %s492_s28  ;;  %p496_p1 = scmp.lt.u32.totalorder %s492_s28, %s664_s0 }
   0x4   :  { %p498_p2 = pnand %p496_p1, %p493_p0 }
   0x6   :  { %501 = shalt.err (!%p498_p2)
}
   0x7   :  { %s502_s10 = scalar_lea.vmem %s20_s25, 128  ;;  %p507_p4 = scmp.lt.s32.totalorder %s20_s25, %s20_s25 }
   0x8   :  { %p503_p3 = scmp.ne.s32.totalorder %s20_s25, %s502_s10  ;;  %p508_p5 = scmp.lt.s32.totalorder %s502_s10, %s502_s10 }
   0xa   :  { %p509_p6 = por %p508_p5, %p507_p4 }
   0xc   :  { %p510_p7 = pnand %p509_p6, %p503_p3 }
   0xe   :  { %513 = shalt.err (!%p510_p7)
}
   0xf   :  { %22 = dma.hbm_to_vmem [thread:$0]  %s664_s0, 128, %s20_s25, [#allocation3]  }
  0x10   :  { %514 = dma.done.wait [#allocation3], 128  }
  0x11   :  { %515 = vsyncadd [#allocation3], 4294967168  ;;  %v517_v0 = vmov 0.0   ;;  %vm518_vm0 = vmmov 0   ;;  %v474_v1 = vld [vmem:[%s665_s1] sm:$0xff]   ;;  %v475_v2 = vld [vmem:[%s665_s1 + $0x8] sm:$0xff]   ;;  %v334_v37 = vlaneseq }
  0x12   :  { %423 = vmatprep.subr.bf16.mxu0 %v517_v0  ;;  %427 = vmatprep.mubr.msk.bf16.mxu0 %vm518_vm0, %v517_v0  ;;  %v39_v3 = vld [vmem:[#allocation2] sm:$0xff]  ;;  %v477_v6 = vld [vmem:[%s667_s3 + $0x8] sm:$0xff]   ;;  %vm64_vm1 = vcmask 261120   ;;  %v478_v7 = vld [vmem:[%s667_s3 + $0x10] sm:$0xff]   ;;  %vm372_vm3 = vcmask 64512  }
  0x13   :  { %431 = vmatprep.subr.bf16.mxu1 %v517_v0  ;;  %447 = vmatprep.mubr.msk.bf16.mxu1 %vm518_vm0, %v517_v0  ;;  %v476_v4 = vld [vmem:[%s667_s3] sm:$0xff]   ;;  %v40_v5 = vpack.c.bf16 %v39_v3, %v39_v3  ;;  %v479_v8 = vld [vmem:[%s667_s3 + $0x18] sm:$0xff]   ;;  %v481_v10 = vld [vmem:[%s667_s3 + $0x28] sm:$0xff]   ;;  %v335_v40 = vand.u32 127, %v334_v37 }
  0x14   :  { %424 = vmatpush3.bf16.msra.mxu0 %v474_v1  ;;  %432 = vmatpush3.bf16.msra.mxu1 %v476_v4  ;;  %v480_v9 = vld [vmem:[%s667_s3 + $0x20] sm:$0xff]   ;;  %v482_v11 = vld [vmem:[%s667_s3 + $0x30] sm:$0xff]   ;;  %v483_v12 = vld [vmem:[%s667_s3 + $0x38] sm:$0xff]  }
  0x15   :  { %425 = vmatprep.subr.bf16.mxu0 %v517_v0  ;;  %433 = vmatprep.subr.bf16.mxu1 %v517_v0  ;;  %v484_v13 = vld [vmem:[%s669_s5] sm:$0xff]   ;;  %v485_v14 = vld [vmem:[%s669_s5 + $0x8] sm:$0xff]   ;;  %v486_v15 = vld [vmem:[%s669_s5 + $0x10] sm:$0xff]   ;;  %vm338_vm2 = vcmp.ge.s32.totalorder %v335_v40, 8 }
  0x16   :  { %v487_v16 = vld [vmem:[%s669_s5 + $0x18] sm:$0xff]   ;;  %v488_v17 = vld [vmem:[%s669_s5 + $0x20] sm:$0xff]   ;;  %v489_v18 = vld [vmem:[%s669_s5 + $0x28] sm:$0xff]  }
  0x17   :  { %v380_v19 = vld [vmem:[%s666_s2] ss:$0 sm:$0xff]  ;;  %v490_v27 = vld [vmem:[%s669_s5 + $0x30] sm:$0xff]   ;;  %v491_v28 = vld [vmem:[%s669_s5 + $0x38] sm:$0xff]  }
  0x18   :  { %426 = vmatpush3.bf16.msra.mxu0 %v475_v2  ;;  %434 = vmatpush3.bf16.msra.mxu1 %v477_v6  ;;  %v384_v29 = vld [vmem:[%s668_s4] ss:$0 sm:$0xff] }
  0x19   :  { %451 = vmatprep.subr.bf16.mxu0 %v517_v0  ;;  %435 = vmatprep.subr.bf16.mxu1 %v517_v0  ;;  %v393_v38 = vld [vmem:[%s670_s6] ss:$0 sm:$0xff] }
  0x1b   :  { %428 = vmatmul.mubr.msk.bf16.vlgmr.msra.gmra.mrb[0].mxu0 %vm64_vm1, %v40_v5 }
  0x1c   :  { %467 = vmatprep.mubr.msk.bf16.mxu0 %vm518_vm0, %v517_v0  ;;  %436 = vmatpush3.bf16.msra.mxu1 %v478_v7 }
  0x1d   :  { %437 = vmatprep.subr.bf16.mxu1 %v517_v0  ;;  %452 = vmatpush3.bf16.msra.mxu0 %v484_v13 }
  0x1e   :  { %453 = vmatprep.subr.bf16.mxu0 %v517_v0 }
  0x20   :  { %438 = vmatpush3.bf16.msra.mxu1 %v479_v8 }
  0x21   :  { %439 = vmatprep.subr.bf16.mxu1 %v517_v0  ;;  %454 = vmatpush3.bf16.msra.mxu0 %v485_v14 }
  0x22   :  { %455 = vmatprep.subr.bf16.mxu0 %v517_v0 }
  0x24   :  { %440 = vmatpush3.bf16.msra.mxu1 %v480_v9 }
  0x25   :  { %441 = vmatprep.subr.bf16.mxu1 %v517_v0  ;;  %456 = vmatpush3.bf16.msra.mxu0 %v486_v15 }
  0x26   :  { %457 = vmatprep.subr.bf16.mxu0 %v517_v0 }
  0x28   :  { %442 = vmatpush3.bf16.msra.mxu1 %v481_v10 }
  0x29   :  { %443 = vmatprep.subr.bf16.mxu1 %v517_v0  ;;  %458 = vmatpush3.bf16.msra.mxu0 %v487_v16 }
  0x2a   :  { %459 = vmatprep.subr.bf16.mxu0 %v517_v0 }
  0x2c   :  { %444 = vmatpush3.bf16.msra.mxu1 %v482_v11 }
  0x2d   :  { %445 = vmatprep.subr.bf16.mxu1 %v517_v0  ;;  %460 = vmatpush3.bf16.msra.mxu0 %v488_v17 }
  0x2e   :  { %461 = vmatprep.subr.bf16.mxu0 %v517_v0 }
  0x30   :  { %446 = vmatpush3.bf16.msra.mxu1 %v483_v12 }
  0x31   :  { %462 = vmatpush3.bf16.msra.mxu0 %v489_v18 }
  0x32   :  { %463 = vmatprep.subr.bf16.mxu0 %v517_v0 }
  0x35   :  { %464 = vmatpush3.bf16.msra.mxu0 %v490_v27 }
  0x36   :  { %465 = vmatprep.subr.bf16.mxu0 %v517_v0 }
  0x39   :  { %466 = vmatpush3.bf16.msra.mxu0 %v491_v28 }
  0xee   :  { %v102_v20 = vpop.f32.mrb[0].mxu0 }
  0xef   :  { %v103_v21 = vadd.f32 %v380_v19, %v102_v20  ;;  %v429_v22 = vpop.f32.mrb[1].mxu0 }
  0xf0   :  { %v105_v23 = vpop.f32.mrb[2].mxu0 }
  0xf1   :  { %v108_v24 = vmax.f32 %v103_v21, 0.0  ;;  %v430_v25 = vpop.f32.mrb[3].mxu0 }
  0xf3   :  { %v109_v26 = vpack.c.bf16 %v108_v24, %v108_v24 }
  0xf5   :  { %448 = vmatmul.mubr.bf16.vlgmr.msra.gmra.mrb[0].mxu1 %v109_v26 }
 0x1c8   :  { %v215_v30 = vpop.f32.mrb[0].mxu1 }
 0x1c9   :  { %v216_v31 = vadd.f32 %v384_v29, %v215_v30  ;;  %v449_v32 = vpop.f32.mrb[1].mxu1 }
 0x1ca   :  { %v218_v33 = vpop.f32.mrb[2].mxu1 }
 0x1cb   :  { %v221_v34 = vmax.f32 %v216_v31, 0.0  ;;  %v450_v35 = vpop.f32.mrb[3].mxu1 }
 0x1cd   :  { %v222_v36 = vpack.c.bf16 %v221_v34, %v221_v34 }
 0x1cf   :  { %468 = vmatmul.mubr.bf16.vlgmr.msra.gmra.mrb[4].mxu0 %v222_v36 }
 0x2a2   :  { %v328_v39 = vpop.f32.mrb[4].mxu0 }
 0x2a3   :  { %v329_v41 = vadd.f32 %v393_v38, %v328_v39  ;;  %v469_v42 = vpop.f32.mrb[5].mxu0 }
 0x2a4   :  { %v331_v43 = vpop.f32.mrb[6].mxu0 }
 0x2a5   :  { %v336_v44 = vmax.f32 %v329_v41, -20.0  ;;  %v470_v45 = vpop.f32.mrb[7].mxu0 }
 0x2a7   :  { %v337_v46 = vmin.f32 %v336_v44, 2.0 }
 0x2a9   :  { %v339_v47 = vsel %vm338_vm2, %v337_v46, %v329_v41 }
 0x2aa   :  { %340 = vxpose.xlu0.b32.start.end [1/1] (short) (narrow) %v339_v47, 16 }
 0x32a   :  { %v356_v48 = vpop.trf.xlu0 }
 0x32b   :  { %373 = vst.msk [vmem:[%s671_s7] sm:$0xff] %vm372_vm3, %v356_v48 }
 0x32e   :  { %v357_v49 = vpop.trf.xlu0 }
 0x32f   :  { %374 = vst.msk [vmem:[%s671_s7 + $0x8] sm:$0xff] %vm372_vm3, %v357_v49 }
 0x330   :  { %379 = vsyncpa [#allocation3], 1 }

</bundles_post_ra>
